<compile_context>
chip_gen: v7x
topology: tpu7x:2x2x1
jax: 0.10.0
libtpu: 0.0.40
codegen_flags: <defaults>
</compile_context>

<pallas_src>
import jax
import jax.numpy as jnp
from jax.experimental import pallas as pl
from jax.experimental.pallas import tpu as pltpu

block_size = 256      # max sequence length supported by the causal mask
n_embed = 384
dropout_p = 0.2       # kept for parity with the module (eval-mode identity)


def _head_kernel(x_ref, w_ref, o_ref):
    # x_ref : (bb, T, C)   f32 activations for `bb` batch elements (VMEM)
    # w_ref : (C, 3H)      bf16 fused [K | Q*scale | V] projection weights
    # o_ref : (bb, T, H)   f32 attention output for these batch elements
    bb, T, C = x_ref.shape
    H = o_ref.shape[-1]

    # f32 -> bf16 cast happens in-kernel (review item): x is read from HBM as
    # f32 exactly once, and the cast hides under the projection matmul.
    x = x_ref[...].astype(jnp.bfloat16)              # (bb, T, C) bf16
    w = w_ref[...]                                   # (C, 3H)    bf16

    # Fused QKV projection: one (bb*T, C) @ (C, 3H) MXU pass, f32 accumulation.
    kqv = jnp.dot(x.reshape(bb * T, C), w,
                  preferred_element_type=jnp.float32)        # (bb*T, 3H) f32
    kqv = kqv.reshape(bb, T, 3 * H)
    # NOTE: with a single 64-wide head one of these slices (lanes 64..127) is
    # unavoidably lane-misaligned; negligible vs. the matmuls at this size.
    k = kqv[..., 0 * H:1 * H]                                # (bb, T, H)
    q = kqv[..., 1 * H:2 * H]                                # scale pre-folded
    v = kqv[..., 2 * H:3 * H]

    # Attention scores: contract the last dims directly (no explicit k.T).
    wei = jax.lax.dot_general(
        q.astype(jnp.bfloat16), k.astype(jnp.bfloat16),
        dimension_numbers=(((2,), (2,)), ((0,), (0,))),
        preferred_element_type=jnp.float32)                  # (bb, T, T) f32

    # Causal mask (tril == 0 -> -inf); diagonal always unmasked so rows stay
    # finite under the softmax max-subtraction.
    row = jax.lax.broadcasted_iota(jnp.int32, (T, T), 0)
    col = jax.lax.broadcasted_iota(jnp.int32, (T, T), 1)
    wei = jnp.where((row >= col)[None, :, :], wei, -jnp.inf)

    # Row-wise softmax, numerically stable, f32 elementwise math.
    m = jnp.max(wei, axis=-1, keepdims=True)
    e = jnp.exp(wei - m)
    s = jnp.sum(e, axis=-1, keepdims=True)
    p = e * pl.reciprocal(s, approx=True)

    # TODO(synk): nn.Dropout(0.2) on the attention probabilities is omitted
    # (eval-mode identity); training would use pltpu.prng_seed/prng_random_bits.

    # Weighted sum of values: bf16 operands, f32 accumulation.
    out = jax.lax.dot_general(
        p.astype(jnp.bfloat16), v.astype(jnp.bfloat16),
        dimension_numbers=(((2,), (1,)), ((0,), (0,))),
        preferred_element_type=jnp.float32)                  # (bb, T, H)

    o_ref[...] = out.astype(o_ref.dtype)


def _pick_block_b(B, T, C, H, vmem_budget_bytes=12 << 20):
    """Batch-block size: VMEM-budgeted, and grid length >= 2 when B >= 2."""
    per_b = (2 * T * C * 4      # double-buffered f32 x block
             + T * C * 2        # in-kernel bf16 copy of x
             + T * 3 * H * 4    # kqv f32
             + 3 * T * H * 2    # bf16 k/q/v MXU operands
             + 2 * T * T * 4    # wei + exp(wei) f32
             + T * T * 2        # bf16 probabilities
             + 2 * T * H * 4)   # double-buffered f32 out block
    bb = int(max(1, min(B, 16, vmem_budget_bytes // per_b)))
    if B >= 2:
        # Keep at least 2 grid steps so both v7x TensorCores get work.
        bb = max(1, min(bb, B // 2))
    while B % bb:                # largest divisor of B not exceeding bb
        bb -= 1
    return bb


def head_forward(x, w_key, w_query, w_value, *, block_b=None):
    """x: (B, T, C) float32; w_*: (C, H) float32.  Returns (B, T, H) float32."""
    B, T, C = x.shape
    H = w_key.shape[1]
    assert C == n_embed and T <= block_size

    if block_b is None:
        block_b = _pick_block_b(B, T, C, H)
    assert B % block_b == 0, "B must be divisible by block_b"

    # Fold the C**-0.5 score scale into the query projection, fuse K/Q/V into
    # a single (C, 3H) weight, cast only the (small) weight to bf16 up front.
    scale = jnp.float32(C) ** jnp.float32(-0.5)
    w_kqv = jnp.concatenate([w_key, w_query * scale, w_value], axis=1)
    w_bf16 = w_kqv.astype(jnp.bfloat16)

    return pl.pallas_call(
        _head_kernel,
        out_shape=jax.ShapeDtypeStruct((B, T, H), jnp.float32),
        grid_spec=pltpu.PrefetchScalarGridSpec(
            num_scalar_prefetch=0,
            grid=(B // block_b,),
            in_specs=[
                pl.BlockSpec((block_b, T, C), lambda b: (b, 0, 0)),  # x (f32)
                pl.BlockSpec((C, 3 * H), lambda b: (0, 0)),          # fused W
            ],
            out_specs=pl.BlockSpec((block_b, T, H), lambda b: (b, 0, 0)),
        ),
        compiler_params=pltpu.CompilerParams(
            dimension_semantics=("parallel",),   # batch-block axis -> megacore
            vmem_limit_bytes=32 << 20,           # lift v5e's 16 MiB scoped default
        ),
    )(x, w_bf16)


def _reference(x, w_key, w_query, w_value):
    """Pure-JAX f32 reference matching the PyTorch forward (eval mode)."""
    B, T, C = x.shape
    k = x @ w_key
    q = x @ w_query
    v = x @ w_value
    wei = (q @ jnp.swapaxes(k, -2, -1)) * (C ** -0.5)
    mask = jnp.tril(jnp.ones((T, T), dtype=bool))
    wei = jnp.where(mask[None, :, :], wei, -jnp.inf)
    wei = jax.nn.softmax(wei, axis=-1)
    return wei @ v


if __name__ == "__main__":
    key = jax.random.PRNGKey(0)
    B, T, head_size = 4, 16, 64

    kx, kk, kq, kv = jax.random.split(key, 4)
    x = jax.random.normal(kx, (B, T, n_embed), dtype=jnp.float32)
    # Deterministic Linear weights (no bias), stored as (in_features, out_features).
    w_scale = n_embed ** -0.5
    w_key = jax.random.normal(kk, (n_embed, head_size), dtype=jnp.float32) * w_scale
    w_query = jax.random.normal(kq, (n_embed, head_size), dtype=jnp.float32) * w_scale
    w_value = jax.random.normal(kv, (n_embed, head_size), dtype=jnp.float32) * w_scale

    out = head_forward(x, w_key, w_query, w_value)   # default block_b -> grid=(2,)
    out = jax.block_until_ready(out)

    ref = _reference(x, w_key, w_query, w_value)
    assert out.shape == (B, T, head_size)
    # bf16 MXU operands with f32 accumulation: compare at bf16-level tolerance.
    assert jnp.allclose(out, ref, atol=3e-2, rtol=3e-2), "mismatch vs reference"

    print("KERNEL_OK")
</pallas_src>

<mosaic_0001>
module attributes {stable_mosaic.version = 11 : i64} {
  func.func @_head_kernel(%arg0: i32, %arg1: memref<2x16x384xf32, #tpu.memory_space<vmem>>, %arg2: memref<384x192xbf16, #tpu.memory_space<vmem>>, %arg3: memref<2x16x64xf32, #tpu.memory_space<vmem>>) attributes {dimension_semantics = [#tpu.dimension_semantics<parallel>], iteration_bounds = array<i64: 2>, scalar_prefetch = 0 : i64, scratch_operands = 0 : i64, tpu.core_type = #tpu.core_type<tc>, window_params = [{transform_indices = @transform_0, window_bounds = array<i64: 2, 16, 384>}, {pipeline_mode = #tpu.pipeline_mode<synchronous>, transform_indices = @transform_1, window_bounds = array<i64: 384, 192>}, {transform_indices = @transform_2, window_bounds = array<i64: 2, 16, 64>}]} {
    %c0 = arith.constant 0 : index
    %c0_0 = arith.constant 0 : index
    %c0_1 = arith.constant 0 : index
    %0 = vector.load %arg1[%c0, %c0_0, %c0_1] : memref<2x16x384xf32, #tpu.memory_space<vmem>>, vector<2x16x384xf32>
    %1 = arith.truncf %0 : vector<2x16x384xf32> to vector<2x16x384xbf16>
    %c0_2 = arith.constant 0 : index
    %c0_3 = arith.constant 0 : index
    %2 = vector.load %arg2[%c0_2, %c0_3] : memref<384x192xbf16, #tpu.memory_space<vmem>>, vector<384x192xbf16>
    %3 = vector.shape_cast %1 : vector<2x16x384xbf16> to vector<32x384xbf16>
    %cst = arith.constant dense<0.000000e+00> : vector<32x192xf32>
    %4 = tpu.matmul %3, %2, %cst {dimension_numbers = #tpu.dot_dimension_numbers<[1], [0], [0], [1], [0, 0, 1, 1], [], []>} : vector<32x384xbf16>, vector<384x192xbf16>, vector<32x192xf32> -> vector<32x192xf32>
    %5 = vector.shape_cast %4 : vector<32x192xf32> to vector<2x16x192xf32>
    %6 = vector.extract_strided_slice %5 {offsets = [0, 0, 0], sizes = [2, 16, 64], strides = [1, 1, 1]} : vector<2x16x192xf32> to vector<2x16x64xf32>
    %7 = vector.extract_strided_slice %5 {offsets = [0, 0, 64], sizes = [2, 16, 64], strides = [1, 1, 1]} : vector<2x16x192xf32> to vector<2x16x64xf32>
    %8 = vector.extract_strided_slice %5 {offsets = [0, 0, 128], sizes = [2, 16, 64], strides = [1, 1, 1]} : vector<2x16x192xf32> to vector<2x16x64xf32>
    %9 = arith.truncf %7 : vector<2x16x64xf32> to vector<2x16x64xbf16>
    %10 = arith.truncf %6 : vector<2x16x64xf32> to vector<2x16x64xbf16>
    %cst_4 = arith.constant dense<0.000000e+00> : vector<2x16x16xf32>
    %11 = tpu.matmul %9, %10, %cst_4 {dimension_numbers = #tpu.dot_dimension_numbers<[2], [2], [1], [1], [0, 0, 0, 1, 1, 1], [0], [0]>} : vector<2x16x64xbf16>, vector<2x16x64xbf16>, vector<2x16x16xf32> -> vector<2x16x16xf32>
    %12 = tpu.iota {dimensions = array<i32: 0>} : vector<16x16xi32>
    %13 = tpu.iota {dimensions = array<i32: 1>} : vector<16x16xi32>
    %14 = arith.cmpi sge, %12, %13 : vector<16x16xi32>
    %15 = vector.shape_cast %14 : vector<16x16xi1> to vector<1x16x16xi1>
    %cst_5 = arith.constant 0xFF800000 : f32
    %16 = vector.shape_cast %15 : vector<1x16x16xi1> to vector<1x16x16xi1>
    %17 = vector.broadcast %16 : vector<1x16x16xi1> to vector<2x16x16xi1>
    %18 = vector.broadcast %cst_5 : f32 to vector<2x16x16xf32>
    %19 = arith.select %17, %11, %18 : vector<2x16x16xi1>, vector<2x16x16xf32>
    %cst_6 = arith.constant dense<0xFF800000> : vector<2x16xf32>
    %20 = vector.multi_reduction <maximumf>, %19, %cst_6 [2] : vector<2x16x16xf32> to vector<2x16xf32>
    %21 = vector.shape_cast %20 : vector<2x16xf32> to vector<2x16x1xf32>
    %22 = vector.broadcast %21 : vector<2x16x1xf32> to vector<2x16x16xf32>
    %23 = arith.subf %19, %22 : vector<2x16x16xf32>
    %24 = math.exp %23 : vector<2x16x16xf32>
    %cst_7 = arith.constant dense<0.000000e+00> : vector<2x16xf32>
    %25 = vector.multi_reduction <add>, %24, %cst_7 [2] : vector<2x16x16xf32> to vector<2x16xf32>
    %26 = vector.shape_cast %25 : vector<2x16xf32> to vector<2x16x1xf32>
    %27 = tpu.reciprocal %26 {approx = true} : vector<2x16x1xf32> -> vector<2x16x1xf32>
    %28 = vector.broadcast %27 : vector<2x16x1xf32> to vector<2x16x16xf32>
    %29 = arith.mulf %24, %28 : vector<2x16x16xf32>
    %30 = arith.truncf %29 : vector<2x16x16xf32> to vector<2x16x16xbf16>
    %31 = arith.truncf %8 : vector<2x16x64xf32> to vector<2x16x64xbf16>
    %cst_8 = arith.constant dense<0.000000e+00> : vector<2x16x64xf32>
    %32 = tpu.matmul %30, %31, %cst_8 {dimension_numbers = #tpu.dot_dimension_numbers<[2], [1], [1], [2], [0, 0, 0, 1, 1, 2], [0], [0]>} : vector<2x16x16xbf16>, vector<2x16x64xbf16>, vector<2x16x64xf32> -> vector<2x16x64xf32>
    %c0_9 = arith.constant 0 : index
    %c0_10 = arith.constant 0 : index
    %c0_11 = arith.constant 0 : index
    %33 = vector.load %arg3[%c0_9, %c0_10, %c0_11] : memref<2x16x64xf32, #tpu.memory_space<vmem>>, vector<2x16x64xf32>
    tpu.vector_store %arg3[%c0_9, %c0_10, %c0_11], %32 {strides = array<i32>} : memref<2x16x64xf32, #tpu.memory_space<vmem>>, vector<2x16x64xf32>,
    return
  }
  func.func @transform_0(%arg0: i32) -> (i32, i32, i32) {
    %c0_i32 = arith.constant 0 : i32
    %c0_i32_0 = arith.constant 0 : i32
    %c0_i32_1 = arith.constant 0 : i32
    return %arg0, %c0_i32, %c0_i32_0 : i32, i32, i32
  }
  func.func @transform_1(%arg0: i32) -> (i32, i32) {
    %c0_i32 = arith.constant 0 : i32
    %c0_i32_0 = arith.constant 0 : i32
    %c0_i32_1 = arith.constant 0 : i32
    return %c0_i32, %c0_i32_0 : i32, i32
  }
  func.func @transform_2(%arg0: i32) -> (i32, i32, i32) {
    %c0_i32 = arith.constant 0 : i32
    %c0_i32_0 = arith.constant 0 : i32
    %c0_i32_1 = arith.constant 0 : i32
    return %arg0, %c0_i32, %c0_i32_0 : i32, i32, i32
  }
}

</mosaic_0001>

<bundles_post_ra>
// kernel: tpu_custom_call.1
= control target key start
LH: loop header
LB: loop body
LE: loop exit
PB: predicated region body
PF: predicated region fallthrough
CT: control target
= control target key end

     0   :  { %7 = vsyncpa [#allocation3], 0  ;;  %s1525_s0 = inlined_call_operand.vmem [shape: f32[4,16,384], index: 0, kind: input, shape index: {}]   ;;  %s1526_s1 = inlined_call_operand.vmem [shape: bf16[384,192], index: 1, kind: input, shape index: {}]   ;;  %s1527_s2 = inlined_call_operand.hbm [shape: f32[4,16,64], index: 2, kind: output, shape index: {}]  }
   0x1   :  { %9 = vsyncpa [#allocation3 + $0x1], 0  ;;  %s1224_s9 = smov 0   ;;  %s1226_s10 = smov 0  }
   0x2   :  { %s1228_s11 = smov 0   ;;  %s1230_s12 = smov 0  }
   0x3 LB: > { %s1245_s13 = sadd.s32 4294967295, %s1200_s12   ;;  %s897_s14 = sadd.s32 4294967294, %s1200_s12   ;;  %s1200_s12 = sphi %s1230_s12, %s1533_s12   ;;  %s1196_s11 = sphi %s1228_s11, %s1532_s11   ;;  %s1192_s10 = sphi %s1226_s10, %s1531_s10   ;;  %s1188_s9 = sphi %s1224_s9, %s1530_s9  }
   0x4   : > { %s1249_s15 = sadd.s32 1, %s1200_s12   ;;  %s69_s16 = sadd.s32 1, %s1196_s11 }
   0x5   : > { %s66_s17 = ssub.s32 %s1200_s12, %s1249_s15  ;;  %p79_p0 = scmp.ne.s32.totalorder %s1196_s11, %s1192_s10 }
   0x6   : > { %p67_p1 = scmp.eq.s32.totalorder %s66_s17, 0  ;;  %p80_p2 = scmp.eq.s32.totalorder %s1245_s13, 1 }
   0x7   : > { %p85_p3 = scmp.ne.s32.totalorder %s1192_s10, %s1188_s9  ;;  %p86_p4 = scmp.eq.s32.totalorder %s897_s14, 1 }
   0x8   : > { %s1260_s18 = scalar_select %p67_p1, %s1196_s11, %s69_s16  }
   0x9   : > { %p1262_p5 = por %p80_p2, %p79_p0  ;;  %p1266_p6 = por %p86_p4, %p85_p3 }
   0xa   : > { %p900_p7 = scmp.ge.s32.totalorder %s1200_s12, 1  ;;  %p117_p8 = scmp.lt.s32.totalorder %s1200_s12, 3 }
   0xc   : > { %p118_p9 = pnand %p900_p7, %p117_p8 }
   0xd   : > { %v1050_v0 = vld [vmem:[%s1526_s1 + $0x4] ss:$8 sps:$4 sm:$0xff] (!%p118_p9)   ;;  %v1052_v1 = vld [vmem:[%s1526_s1] ss:$8 sps:$4 sm:$0xff] (!%p118_p9)   ;;  %v1202_v2 = vmov (!%p118_p9), 0   ;;  %s902_s6 = sshll.u32 (!%p118_p9), %s1245_s13, 1 }
   0xe   : > { %121 = sbr.rel (%p118_p9) target bundleno = 1181 (0x49d), region = 28  ;;  %540 = vmatprep.mubr.bf16.mxu1 (!%p118_p9), %v1202_v2  ;;  %455 = vmatprep.subr.bf16.mxu0 (!%p118_p9), %v1050_v0  ;;  %v1053_v3 = vld [vmem:[%s1526_s1 + $0x14] ss:$8 sps:$4 sm:$0xff] (!%p118_p9)   ;;  %v1055_v4 = vld [vmem:[%s1526_s1 + $0x10] ss:$8 sps:$4 sm:$0xff] (!%p118_p9)   ;;  %p141_p10 = scmp.lt.s32.totalorder (!%p118_p9), %s902_s6, 3 }
   0xf   : > { %456 = vmatpush1.bf16.msra.mxu0 (!%p118_p9), %v1052_v1  ;;  %v1056_v5 = vld [vmem:[%s1526_s1 + $0x24] ss:$8 sps:$4 sm:$0xff] (!%p118_p9)   ;;  %v1058_v6 = vld [vmem:[%s1526_s1 + $0x20] ss:$8 sps:$4 sm:$0xff] (!%p118_p9)   ;;  %v1059_v7 = vld [vmem:[%s1526_s1 + $0x34] ss:$8 sps:$4 sm:$0xff] (!%p118_p9)  }
  0x10   : > { %457 = vmatprep.subr.bf16.mxu0 (!%p118_p9), %v1053_v3  ;;  %v1061_v8 = vld [vmem:[%s1526_s1 + $0x30] ss:$8 sps:$4 sm:$0xff] (!%p118_p9)   ;;  %v1074_v9 = vld [vmem:[%s1526_s1 + $0x104] ss:$8 sps:$4 sm:$0xff] (!%p118_p9)   ;;  %v1076_v10 = vld [vmem:[%s1526_s1 + $0x100] ss:$8 sps:$4 sm:$0xff] (!%p118_p9)  }
  0x11   : > { %v1062_v11 = vld [vmem:[%s1526_s1 + $0x44] ss:$8 sps:$4 sm:$0xff] (!%p118_p9)   ;;  %508 = vmatprep.subr.bf16.mxu1 (!%p118_p9), %v1074_v9  ;;  %v1080_v12 = vld [vmem:[%s1526_s1 + $0x114] ss:$8 sps:$4 sm:$0xff] (!%p118_p9)   ;;  %v1082_v13 = vld [vmem:[%s1526_s1 + $0x110] ss:$8 sps:$4 sm:$0xff] (!%p118_p9)  }
  0x12   : > { %509 = vmatpush1.bf16.msra.mxu1 (!%p118_p9), %v1076_v10  ;;  %v1064_v14 = vld [vmem:[%s1526_s1 + $0x40] ss:$8 sps:$4 sm:$0xff] (!%p118_p9)   ;;  %v1065_v15 = vld [vmem:[%s1526_s1 + $0x54] ss:$8 sps:$4 sm:$0xff] (!%p118_p9)   ;;  %v1086_v16 = vld [vmem:[%s1526_s1 + $0x124] ss:$8 sps:$4 sm:$0xff] (!%p118_p9)  }
  0x13   : > { %458 = vmatpush1.bf16.msra.mxu0 (!%p118_p9), %v1055_v4  ;;  %510 = vmatprep.subr.bf16.mxu1 (!%p118_p9), %v1080_v12  ;;  %v1088_v17 = vld [vmem:[%s1526_s1 + $0x120] ss:$8 sps:$4 sm:$0xff] (!%p118_p9)   ;;  %v1067_v18 = vld [vmem:[%s1526_s1 + $0x50] ss:$8 sps:$4 sm:$0xff] (!%p118_p9)   ;;  %v1092_v19 = vld [vmem:[%s1526_s1 + $0x134] ss:$8 sps:$4 sm:$0xff] (!%p118_p9)  }
  0x14   : > { %459 = vmatprep.subr.bf16.mxu0 (!%p118_p9), %v1056_v5  ;;  %v1068_v20 = vld [vmem:[%s1526_s1 + $0x64] ss:$8 sps:$4 sm:$0xff] (!%p118_p9)   ;;  %v1094_v21 = vld [vmem:[%s1526_s1 + $0x130] ss:$8 sps:$4 sm:$0xff] (!%p118_p9)   ;;  %v1070_v22 = vld [vmem:[%s1526_s1 + $0x60] ss:$8 sps:$4 sm:$0xff] (!%p118_p9)  }
  0x15   : > { %v1098_v23 = vld [vmem:[%s1526_s1 + $0x144] ss:$8 sps:$4 sm:$0xff]   ;;  %s1535_s6 = smov (!%p141_p10, %s902_s6), 3  ;;  %v1071_v24 = vld [vmem:[%s1526_s1 + $0x74] ss:$8 sps:$4 sm:$0xff]   ;;  %v1203_v3 = vmov 0.0  }
  0x16   : > { %511 = vmatpush1.bf16.msra.mxu1 %v1082_v13  ;;  %v1100_v25 = vld [vmem:[%s1526_s1 + $0x140] ss:$8 sps:$4 sm:$0xff]   ;;  %v1073_v26 = vld [vmem:[%s1526_s1 + $0x70] ss:$8 sps:$4 sm:$0xff]   ;;  %v1104_v27 = vld [vmem:[%s1526_s1 + $0x154] ss:$8 sps:$4 sm:$0xff]  }
  0x17   : > { %460 = vmatpush1.bf16.msra.mxu0 %v1058_v6  ;;  %512 = vmatprep.subr.bf16.mxu1 %v1086_v16  ;;  %s1004_s17 = smul.u32 48, %s1535_s6  ;;  %v1077_v28 = vld [vmem:[%s1526_s1 + $0x84] ss:$8 sps:$4 sm:$0xff]   ;;  %v1106_v29 = vld [vmem:[%s1526_s1 + $0x150] ss:$8 sps:$4 sm:$0xff]   ;;  %vm1204_vm0 = vmmov 0  }
  0x18   : > { %461 = vmatprep.subr.bf16.mxu0 %v1059_v7  ;;  %v1079_v30 = vld [vmem:[%s1526_s1 + $0x80] ss:$8 sps:$4 sm:$0xff]   ;;  %v1110_v31 = vld [vmem:[%s1526_s1 + $0x164] ss:$8 sps:$4 sm:$0xff]   ;;  %v1083_v32 = vld [vmem:[%s1526_s1 + $0x94] ss:$8 sps:$4 sm:$0xff]  }
  0x19   : > { %s1370_s30 = scalar_lea.vmem %s1525_s0, %s1004_s17  ;;  %v1112_v35 = vld [vmem:[%s1526_s1 + $0x160] ss:$8 sps:$4 sm:$0xff]   ;;  %v1085_v37 = vld [vmem:[%s1526_s1 + $0x90] ss:$8 sps:$4 sm:$0xff]   ;;  %v1116_v38 = vld [vmem:[%s1526_s1 + $0x174] ss:$8 sps:$4 sm:$0xff]  }
  0x1a   : > { %513 = vmatpush1.bf16.msra.mxu1 %v1088_v17  ;;  %v150_v33 = vld [vmem:[%s1370_s30 + $0x8] sm:$0xff]  ;;  %v153_v34 = vld [vmem:[%s1370_s30 + $0x20] sm:$0xff]  ;;  %v1118_v40 = vld [vmem:[%s1526_s1 + $0x170] ss:$8 sps:$4 sm:$0xff]   ;;  %vm566_vm1 = vcmask 523264   ;;  %vm679_vm3 = vcmask 130048  }
  0x1b   : > { %462 = vmatpush1.bf16.msra.mxu0 %v1061_v8  ;;  %514 = vmatprep.subr.bf16.mxu1 %v1092_v19  ;;  %v162_v36 = vpack.c.bf16 %v153_v34, %v150_v33  ;;  %v1089_v39 = vld [vmem:[%s1526_s1 + $0xa4] ss:$8 sps:$4 sm:$0xff]   ;;  %v151_v41 = vld [vmem:[%s1370_s30 + $0x10] sm:$0xff]  ;;  %v1091_v43 = vld [vmem:[%s1526_s1 + $0xa0] ss:$8 sps:$4 sm:$0xff]   ;;  %s137_s6 = sand.u32 1, %s1192_s10  }
  0x1c   : > { %463 = vmatprep.subr.bf16.mxu0 %v1062_v11  ;;  %v154_v42 = vld [vmem:[%s1370_s30 + $0x28] sm:$0xff]  ;;  %v1095_v44 = vld [vmem:[%s1526_s1 + $0xb4] ss:$8 sps:$4 sm:$0xff]   ;;  %v1097_v46 = vld [vmem:[%s1526_s1 + $0xb0] ss:$8 sps:$4 sm:$0xff]   ;;  %s901_s29 = sshll.u32 %s137_s6, 5 }
  0x1d   : > { %487 = vmatprep.mubr.bf16.mxu0 %v162_v36  ;;  %v163_v45 = vpack.c.bf16 %v154_v42, %v151_v41  ;;  %v1101_v47 = vld [vmem:[%s1526_s1 + $0xc4] ss:$8 sps:$4 sm:$0xff]   ;;  %v160_v49 = vld [vmem:[%s1370_s30 + $0x58] sm:$0xff]  ;;  %v1103_v50 = vld [vmem:[%s1526_s1 + $0xc0] ss:$8 sps:$4 sm:$0xff]   ;;  %v664_v36 = vlaneseq  ;;  %s139_s3 = scalar_lea.vmem [#allocation2], %s901_s29 }
  0x1e   : > { %515 = vmatpush1.bf16.msra.mxu1 %v1094_v21  ;;  %v157_v48 = vld [vmem:[%s1370_s30 + $0x40] sm:$0xff]  ;;  %v1107_v51 = vld [vmem:[%s1526_s1 + $0xd4] ss:$8 sps:$4 sm:$0xff]   ;;  %v1109_v53 = vld [vmem:[%s1526_s1 + $0xd0] ss:$8 sps:$4 sm:$0xff]   ;;  %s835_s4 = sshll.u32 %s139_s3, 4  ;;  %s1475_s4 = int_to_ptr.vmem [resolvable:$true] %s835_s4 }
  0x1f   : > { %464 = vmatpush1.bf16.msra.mxu0 %v1064_v14  ;;  %516 = vmatprep.subr.bf16.mxu1 %v1098_v23  ;;  %v166_v52 = vpack.c.bf16 %v160_v49, %v157_v48  ;;  %v1113_v54 = vld [vmem:[%s1526_s1 + $0xe4] ss:$8 sps:$4 sm:$0xff]   ;;  %v1115_v55 = vld [vmem:[%s1526_s1 + $0xe0] ss:$8 sps:$4 sm:$0xff]   ;;  %v1119_v56 = vld [vmem:[%s1526_s1 + $0xf4] ss:$8 sps:$4 sm:$0xff]  }
  0x20   : > { %465 = vmatprep.subr.bf16.mxu0 %v1065_v15  ;;  %v1121_v57 = vld [vmem:[%s1526_s1 + $0xf0] ss:$8 sps:$4 sm:$0xff]   ;;  %v149_v58 = vld [vmem:[%s1370_s30] sm:$0xff]  ;;  %v158_v1 = vld [vmem:[%s1370_s30 + $0x48] sm:$0xff]  ;;  %s963_s5 = sshll.u32 %s1245_s13, 9  ;;  %s1484_s16 = scalar_lea.sflag [#allocation3], %s137_s6 }
  0x21   : > { %v152_v59 = vld [vmem:[%s1370_s30 + $0x18] sm:$0xff]  ;;  %v159_v61 = vld [vmem:[%s1370_s30 + $0x50] sm:$0xff]  ;;  %s1481_s14 = scalar_lea.hbm %s1527_s2, %s963_s5  ;;  %s1138_s13 = scalar_lea.vmem %s1475_s4, 512 }
  0x22   : > { %517 = vmatpush1.bf16.msra.mxu1 %v1100_v25  ;;  %v156_v60 = vld [vmem:[%s1370_s30 + $0x38] sm:$0xff]  ;;  %v161_v62 = vpack.c.bf16 %v152_v59, %v149_v58  ;;  %v155_v0 = vld [vmem:[%s1370_s30 + $0x30] sm:$0xff]  ;;  %s1205_s30 = smov 64   ;;  %p1139_p11 = scmp.ne.s32.totalorder %s1475_s4, %s1138_s13 }
  0x23   : > { %466 = vmatpush1.bf16.msra.mxu0 %v1067_v18  ;;  %518 = vmatprep.subr.bf16.mxu1 %v1104_v27  ;;  %v165_v63 = vpack.c.bf16 %v159_v61, %v156_v60  ;;  %s1206_s17 = smov [#allocation2]  }
  0x24   : > { %467 = vmatprep.subr.bf16.mxu0 %v1068_v20  ;;  %p1140_p12 = pnand %p1139_p11, %p1262_p5  ;;  %s1142_s21 = sshll.u32 %s1206_s17, 4  ;;  %s1143_s21 = int_to_ptr.vmem [resolvable:$false] %s1142_s21 }
  0x25   : > { %s1144_s22 = scalar_lea.vmem %s1143_s21, 1024  ;;  %p1145_p0 = scmp.lt.s32.totalorder %s1475_s4, %s1143_s21 }
  0x26   : > { %519 = vmatpush1.bf16.msra.mxu1 %v1106_v29  ;;  %p1141_p13 = pneg %p1140_p12  ;;  %p1146_p1 = scmp.lt.s32.totalorder %s1144_s22, %s1138_s13 }
  0x27   : > { %468 = vmatpush1.bf16.msra.mxu0 %v1070_v22  ;;  %520 = vmatprep.subr.bf16.mxu1 %v1110_v31 }
  0x28   : > { %469 = vmatprep.subr.bf16.mxu0 %v1071_v24  ;;  %p1147_p2 = por %p1146_p1, %p1145_p0 }
  0x2a   : > { %521 = vmatpush1.bf16.msra.mxu1 %v1112_v35  ;;  %p1148_p3 = pnand %p1147_p2, %p1141_p13 }
  0x2b   : > { %470 = vmatpush1.bf16.msra.mxu0 %v1073_v26  ;;  %522 = vmatprep.subr.bf16.mxu1 %v1116_v38  ;;  %v668_v38 = vand.u32 127, %v664_v36 }
  0x2c   : > { %471 = vmatprep.subr.bf16.mxu0 %v1077_v28 }
  0x2e   : > { %523 = vmatpush1.bf16.msra.mxu1 %v1118_v40 }
  0x2f   : > { %472 = vmatpush1.bf16.msra.mxu0 %v1079_v30  ;;  %972 = vmatprep.subr.bf16.mxu1 %v1203_v3 }
  0x30   : > { %473 = vmatprep.subr.bf16.mxu0 %v1083_v32 }
  0x31   : > { %541 = vmatmul.mubr.bf16.vlgmr.msra.gmra.mrb[0].mxu1 %v163_v45 }
  0x32   : > { %550 = vmatprep.mubr.bf16.mxu1 %v1202_v2  ;;  %v164_v2 = vpack.c.bf16 %v158_v1, %v155_v0 }
  0x33   : > { %474 = vmatpush1.bf16.msra.mxu0 %v1085_v37  ;;  %v665_v37 = vshrl.u32 %v664_v36, 7 }
  0x34   : > { %475 = vmatprep.subr.bf16.mxu0 %v1089_v39 }
  0x35   : > { %v666_v39 = vadd.s32 8, %v665_v37  ;;  %vm669_vm2 = vcmp.ge.s32.totalorder %v665_v37, %v668_v38 }
  0x37   : > { %476 = vmatpush1.bf16.msra.mxu0 %v1091_v43  ;;  %vm670_vm4 = vcmp.ge.s32.totalorder %v666_v39, %v668_v38 }
  0x38   : > { %477 = vmatprep.subr.bf16.mxu0 %v1095_v44 }
  0x39   : > { %551 = vmatmul.mubr.bf16.gmra.mrb[4].mxu1 %v166_v52 }
  0x3a   : > { %974 = vmatprep.mubr.msk.bf16.mxu1 %vm1204_vm0, %v1203_v3 }
  0x3b   : > { %478 = vmatpush1.bf16.msra.mxu0 %v1097_v46 }
  0x3c   : > { %479 = vmatprep.subr.bf16.mxu0 %v1101_v47 }
  0x3f   : > { %480 = vmatpush1.bf16.msra.mxu0 %v1103_v50 }
  0x40   : > { %481 = vmatprep.subr.bf16.mxu0 %v1107_v51 }
  0x43   : > { %482 = vmatpush1.bf16.msra.mxu0 %v1109_v53 }
  0x44   : > { %483 = vmatprep.subr.bf16.mxu0 %v1113_v54 }
  0x47   : > { %484 = vmatpush1.bf16.msra.mxu0 %v1115_v55 }
  0x48   : > { %485 = vmatprep.subr.bf16.mxu0 %v1119_v56 }
  0x4b   : > { %486 = vmatpush1.bf16.msra.mxu0 %v1121_v57 }
  0x4e   : > { %488 = vmatmul.mubr.bf16.vlgmr.msra.gmra.mrb[0].mxu0 %v161_v62 }
  0x4f   : > { %497 = vmatprep.mubr.bf16.mxu0 %v165_v63 }
  0x56   : > { %498 = vmatmul.mubr.bf16.gmra.mrb[4].mxu0 %v164_v2 }
 0x104   : > { %v542_v4 = vpop.f32.mrb[0].mxu1 }
 0x105   : > { %v544_v5 = vpop.f32.mrb[1].mxu1 }
 0x106   : > { %v546_v6 = vpop.f32.mrb[2].mxu1 }
 0x107   : > { %v548_v7 = vpop.f32.mrb[3].mxu1 }
 0x10c   : > { %v552_v8 = vpop.f32.mrb[4].mxu1 }
 0x10d   : > { %v554_v9 = vpop.f32.mrb[5].mxu1 }
 0x10e   : > { %v556_v10 = vpop.f32.mrb[6].mxu1 }
 0x10f   : > { %v558_v11 = vpop.f32.mrb[7].mxu1 }
 0x121   : > { %v489_v12 = vpop.f32.mrb[0].mxu0 }
 0x122   : > { %v543_v13 = vadd.f32 %v542_v4, %v489_v12  ;;  %v491_v14 = vpop.f32.mrb[1].mxu0 }
 0x123   : > { %v545_v15 = vadd.f32 %v544_v5, %v491_v14  ;;  %v493_v16 = vpop.f32.mrb[2].mxu0 }
 0x124   : > { %v547_v17 = vadd.f32 %v546_v6, %v493_v16  ;;  %v495_v18 = vpop.f32.mrb[3].mxu0 }
 0x125   : > { %v549_v19 = vadd.f32 %v548_v7, %v495_v18 }
 0x126   : > { %v561_v20 = vpack.c.bf16 %v547_v17, %v543_v13 }
 0x127   : > { %v726_v21 = vpack.c.bf16 %v549_v19, %v545_v15 }
 0x128   : > { %564 = vrot.lane.b32.xlu0 %v561_v20, %s1205_s30  ;;  %v571_v22 = vsel %vm566_vm1, %v561_v20, 0 }
 0x129   : > { %v499_v23 = vpop.f32.mrb[4].mxu0  ;;  %973 = vmatpush3.bf16.xpose.msra.mxu1 %v571_v22 }
 0x12a   : > { %v553_v24 = vadd.f32 %v552_v8, %v499_v23  ;;  %v501_v25 = vpop.f32.mrb[5].mxu0  ;;  %978 = vmatprep.subr.bf16.mxu1 %v1203_v3 }
 0x12b   : > { %v1441_v26 = vadd.f32 %v554_v9, %v501_v25  ;;  %v503_v27 = vpop.f32.mrb[6].mxu0 }
 0x12c   : > { %v557_v28 = vadd.f32 %v556_v10, %v503_v27  ;;  %v505_v29 = vpop.f32.mrb[7].mxu0 }
 0x12d   : > { %v1443_v30 = vadd.f32 %v558_v11, %v505_v29 }
 0x12e   : > { %v562_v31 = vpack.c.bf16 %v557_v28, %v553_v24 }
 0x12f   : > { %v727_v32 = vpack.c.bf16 %v1443_v30, %v1441_v26 }
 0x130   : > { %615 = vrot.lane.b32.xlu0 %v562_v31, %s1205_s30  ;;  %v621_v34 = vsel %vm566_vm1, %v562_v31, 0 }
 0x19a   : > { %v565_v33 = vpop.permute.xlu0 %564 }
 0x19b   : > { %975 = vmatmul.mubr.msk.bf16.vlgmr.msra.gmra.mrb[8].mxu1 %vm566_vm1, %v565_v33 }
 0x19c   : > { %979 = vmatpush3.bf16.xpose.msra.mxu1 %v621_v34  ;;  %980 = vmatprep.mubr.msk.bf16.mxu1 %vm1204_vm0, %v1203_v3 }
 0x19d   : > { %984 = vmatprep.subr.bf16.mxu1 %v1203_v3 }
 0x1a2   : > { %v616_v35 = vpop.permute.xlu0 %615 }
 0x1a3   : > { %981 = vmatmul.mubr.msk.bf16.vlgmr.msra.gmra.mrb[12].mxu1 %vm566_vm1, %v616_v35 }
 0x1a4   : > { %985 = vmatpush3.bf16.msra.mxu1 %v726_v21  ;;  %986 = vmatprep.mubr.msk.bf16.mxu1 %vm1204_vm0, %v1203_v3 }
 0x1a5   : > { %990 = vmatprep.subr.bf16.mxu1 %v1203_v3 }
 0x26e   : > { %v607_v40 = vpop.f32.mrb[8].mxu1 }
 0x26f   : > { %v675_v41 = vsel %vm669_vm2, %v607_v40, -inf  ;;  %v976_v42 = vpop.f32.mrb[9].mxu1 }
 0x270   : > { %v610_v43 = vpop.f32.mrb[10].mxu1  ;;  %v680_v44 = vsel %vm679_vm3, %v675_v41, -inf }
 0x271   : > { %v676_v45 = vsel %vm670_vm4, %v610_v43, -inf  ;;  %681 = vmax.xlane.f32.xlu1 %v680_v44  ;;  %v977_v46 = vpop.f32.mrb[11].mxu1 }
 0x272   : > { %v683_v47 = vsel %vm679_vm3, %v676_v45, -inf }
 0x275   : > { %684 = vmax.xlane.f32.xlu1 %v683_v47 }
 0x276   : > { %v657_v48 = vpop.f32.mrb[12].mxu1 }
 0x277   : > { %v677_v49 = vsel %vm669_vm2, %v657_v48, -inf  ;;  %v982_v50 = vpop.f32.mrb[13].mxu1 }
 0x278   : > { %v660_v51 = vpop.f32.mrb[14].mxu1  ;;  %v686_v52 = vsel %vm679_vm3, %v677_v49, -inf }
 0x279   : > { %v678_v53 = vsel %vm670_vm4, %v660_v51, -inf  ;;  %687 = vmax.xlane.f32.xlu0 %v686_v52  ;;  %v983_v54 = vpop.f32.mrb[15].mxu1 }
 0x27a   : > { %v689_v55 = vsel %vm679_vm3, %v678_v53, -inf }
 0x27b   : > { %690 = vmax.xlane.f32.xlu1 %v689_v55 }
 0x2fe   : > { %v682_v56 = vpop.xlane.xlu1 %681 }
 0x2ff   : > { %v692_v57 = vsub.f32 %v675_v41, %v682_v56 }
 0x301   : > { %v696_v58 = vmul.f32 1.442695, %v692_v57 }
 0x302   : > { %v685_v59 = vpop.xlane.xlu1 %684 }
 0x303   : > { %1122 = vpow2.f32 %v696_v58  ;;  %v693_v60 = vsub.f32 %v676_v45, %v685_v59 }
 0x305   : > { %v698_v61 = vmul.f32 1.442695, %v693_v60 }
 0x306   : > { %v688_v62 = vpop.xlane.xlu0 %687 }
 0x307   : > { %1124 = vpow2.f32 %v698_v61  ;;  %v694_v63 = vsub.f32 %v677_v49, %v688_v62 }
 0x308   : > { %v691_v0 = vpop.xlane.xlu1 %690 }
 0x309   : > { %v700_v1 = vmul.f32 1.442695, %v694_v63  ;;  %v695_v2 = vsub.f32 %v678_v53, %v691_v0 }
 0x30b   : > { %1126 = vpow2.f32 %v700_v1  ;;  %v702_v4 = vmul.f32 1.442695, %v695_v2 }
 0x30d   : > { %v1123_v5 = vpop.eup %1122  ;;  %1128 = vpow2.f32 %v702_v4 }
 0x30e   : > { %v704_v6 = vsel %vm679_vm3, %v1123_v5, 0.0 }
 0x30f   : > { %705 = vadd.xlane.f32.xlu1 %v704_v6 }
 0x311   : > { %v1125_v7 = vpop.eup %1124 }
 0x312   : > { %v707_v8 = vsel %vm679_vm3, %v1125_v7, 0.0 }
 0x313   : > { %708 = vadd.xlane.f32.xlu1 %v707_v8 }
 0x315   : > { %v1127_v9 = vpop.eup %1126 }
 0x316   : > { %v710_v10 = vsel %vm679_vm3, %v1127_v9, 0.0 }
 0x317   : > { %v1129_v11 = vpop.eup %1128  ;;  %711 = vadd.xlane.f32.xlu1 %v710_v10 }
 0x318   : > { %v713_v12 = vsel %vm679_vm3, %v1129_v11, 0.0 }
 0x31b   : > { %714 = vadd.xlane.f32.xlu1 %v713_v12 }
 0x39c   : > { %v706_v13 = vpop.xlane.xlu1 %705 }
 0x39d   : > { %1130 = vrcp.f32 %v706_v13 }
 0x3a0   : > { %v709_v14 = vpop.xlane.xlu1 %708 }
 0x3a1   : > { %1132 = vrcp.f32 %v709_v14 }
 0x3a4   : > { %v712_v15 = vpop.xlane.xlu1 %711 }
 0x3a5   : > { %1134 = vrcp.f32 %v712_v15 }
 0x3a7   : > { %v1131_v17 = vpop.eup %1130 }
 0x3a8   : > { %v715_v16 = vpop.xlane.xlu1 %714  ;;  %v720_v19 = vmul.f32 %v1131_v17, %v1123_v5 }
 0x3a9   : > { %1136 = vrcp.f32 %v715_v16 }
 0x3ab   : > { %v1133_v18 = vpop.eup %1132 }
 0x3ac   : > { %v721_v20 = vmul.f32 %v1133_v18, %v1125_v7 }
 0x3ae   : > { %v724_v21 = vpack.c.bf16 %v721_v20, %v720_v19 }
 0x3af   : > { %v1135_v22 = vpop.eup %1134 }
 0x3b0   : > { %987 = vmatmul.mubr.msk.bf16.vlgmr.msra.gmra.mrb[16].mxu1 %vm679_vm3, %v724_v21  ;;  %v722_v24 = vmul.f32 %v1135_v22, %v1127_v9 }
 0x3b1   : > { %991 = vmatpush3.bf16.msra.mxu1 %v727_v32  ;;  %992 = vmatprep.mubr.msk.bf16.mxu1 %vm1204_vm0, %v1203_v3 }
 0x3b3   : > { %v1137_v23 = vpop.eup %1136 }
 0x3b4   : > { %v723_v25 = vmul.f32 %v1137_v23, %v1129_v11 }
 0x3b6   : > { %v725_v27 = vpack.c.bf16 %v723_v25, %v722_v24 }
 0x3b8   : > { %993 = vmatmul.mubr.msk.bf16.vlgmr.msra.gmra.mrb[20].mxu1 %vm679_vm3, %v725_v27 }
 0x483   : > { %v765_v28 = vpop.f32.mrb[16].mxu1 }
 0x484   : > { %816 = vst.msk [vmem:[%s139_s3] sm:$0xff] %vm566_vm1, %v765_v28  ;;  %v988_v29 = vpop.f32.mrb[17].mxu1 }
 0x485   : > { %v768_v31 = vpop.f32.mrb[18].mxu1 }
 0x486   : > { %817 = vst.msk [vmem:[%s139_s3 + $0x8] sm:$0xff] %vm566_vm1, %v768_v31  ;;  %v989_v26 = vpop.f32.mrb[19].mxu1 }
 0x48b   : > { %v809_v3 = vpop.f32.mrb[20].mxu1 }
 0x48c   : > { %818 = vst.msk [vmem:[%s139_s3 + $0x10] sm:$0xff] %vm566_vm1, %v809_v3  ;;  %v994_v30 = vpop.f32.mrb[21].mxu1 }
 0x48d   : > { %v812_v32 = vpop.f32.mrb[22].mxu1 }
 0x48e   : > { %819 = vst.msk [vmem:[%s139_s3 + $0x18] sm:$0xff] %vm566_vm1, %v812_v32  ;;  %v995_v33 = vpop.f32.mrb[23].mxu1 }
 0x48f   : > { %1151 = shalt.err (!%p1148_p3)
}
 0x490   : > { %s1152_s23 = scalar_lea.hbm %s1481_s14, 512  ;;  %s1156_s26 = scalar_lea.hbm %s1527_s2, 1024 }
 0x491   : > { %p1153_p4 = scmp.ne.s32.totalorder %s1481_s14, %s1152_s23  ;;  %p1157_p9 = scmp.lt.u32.totalorder %s1481_s14, %s1527_s2 }
 0x492   : > { %p1158_p10 = scmp.lt.u32.totalorder %s1156_s26, %s1152_s23  ;;  %p1160_p12 = scmp.lt.u32.totalorder %s1152_s23, %s1481_s14 }
 0x493   : > { %p1154_p7 = pnand %p1153_p4, %p1262_p5 }
 0x494   : > { %p1159_p11 = por %p1158_p10, %p1157_p9 }
 0x495   : > { %p1155_p8 = pneg %p1154_p7 }
 0x496   : > { %p1161_p13 = por %p1160_p12, %p1159_p11 }
 0x498   : > { %p1162_p0 = pnand %p1161_p13, %p1155_p8 }
 0x49a   : > { %1165 = shalt.err (!%p1162_p0)
}
 0x49b   : > { %s1207_s30 = smov 128   ;;  %s1208_s6 = smov 8  }
 0x49c   : > { %1005 = dma.vmem_to_hbm [thread:$0]  (%p1262_p5), %s1475_s4, 512, %s1481_s14, %s1484_s16, %s1207_s30, %s1207_s30, %s1208_s6  }
 0x49d PF: > { %p1011_p1 = scmp.ge.s32.totalorder %s1200_s12, 2  ;;  %s850_s29 = sand.u32 1, %s1188_s9  }
 0x49e   : > { %s851_s3 = scalar_lea.sflag [#allocation3], %s850_s29 }
 0x49f   : > { %p1008_p2 = pnand %p1011_p1, %p1266_p6 }
 0x4a1   : > { %1183 = dma.done.wait (!%p1008_p2), %s851_s3, 512  }
 0x4a2   : > { %1185 = vsyncadd (!%p1008_p2), %s851_s3, 4294966784  ;;  %p12_p3 = scmp.ge.s32.totalorder %s1249_s15, 4   ;;  %s1530_s9 = smov %s1192_s10 }
 0x4a3   : > { %s1531_s10 = smov %s1196_s11  ;;  %s1532_s11 = smov %s1260_s18 }
 0x4a4   : > { %s1533_s12 = smov %s1249_s15  ;;  %14 = sbr.rel (!%p12_p3) target bundleno = 3 (0x3), region = 63 }
 0x4ab   :  { %856 = vsyncpa [#allocation3], 1 }
 0x4ac   :  { %858 = vsyncpa [#allocation3 + $0x1], 1 }

</bundles_post_ra>
